<compile_context>
chip_gen: v7x
topology: tpu7x:2x2x1
jax: 0.10.0
libtpu: 0.0.40
codegen_flags: <defaults>
</compile_context>

<pallas_src>
import functools

import numpy as np
import jax
import jax.numpy as jnp
from jax import lax
from jax.experimental import pallas as pl
from jax.experimental.pallas import tpu as pltpu

LANE = 128                      # vreg lane width (last dim of every block)
TARGET_BLOCK_BYTES = 4 << 20    # ~4 MiB per input block (8192 f32 / 16384 bf16 rows)
NUM_PARTIALS = 2                # 2 independent partial sums -> both TCs on v7x


def _sublane_align(dtype):
    # Rows per packed vreg: 8 for 4-byte, 16 for 2-byte, 32 for 1-byte dtypes.
    return max(8, 32 // np.dtype(dtype).itemsize)


def _make_kernel(*, mse_weight, mae_weight, inv_denom, block_rows, chunk_rows,
                 tiles_per, rows, needs_mask, unroll):
    mse_w = float(mse_weight)
    mae_w = float(mae_weight)
    inv_d = float(inv_denom)
    n_chunks = block_rows // chunk_rows
    sub_groups = chunk_rows // 8

    def kernel(t_ref, p_ref, o_ref, acc_sq, acc_ab):
        k = pl.program_id(1)

        @pl.when(k == 0)
        def _init():
            acc_sq[...] = jnp.zeros_like(acc_sq)
            acc_ab[...] = jnp.zeros_like(acc_ab)

        blk = pl.program_id(0) * tiles_per + k       # un-clamped block index
        row0 = blk * block_rows                      # global first row of block

        def accum_chunk(g, masked):
            start = pl.multiple_of(g * chunk_rows, chunk_rows)
            t = t_ref[pl.ds(start, chunk_rows), :].astype(jnp.float32)
            p = p_ref[pl.ds(start, chunk_rows), :].astype(jnp.float32)
            d = t - p
            if masked:
                # Sublane-only index, broadcast along lanes inside the select.
                ridx = (row0 + start
                        + lax.broadcasted_iota(jnp.int32, (chunk_rows, 1), 0))
                d = jnp.where(ridx < rows, d, 0.0)
            sq = d * d
            ab = jnp.abs(d)
            if sub_groups > 1:
                sq = jnp.sum(sq.reshape(sub_groups, 8, LANE), axis=0)
                ab = jnp.sum(ab.reshape(sub_groups, 8, LANE), axis=0)
            acc_sq[...] += sq
            acc_ab[...] += ab

        def run(masked):
            def body(g, carry):
                accum_chunk(g, masked)
                return carry
            lax.fori_loop(0, n_chunks, body, 0, unroll=unroll)

        if needs_mask:
            # Mask-free path for all fully-interior blocks; only the partial
            # edge block and the clamped duplicate blocks pay the mask.
            @pl.when(row0 + block_rows <= rows)
            def _interior():
                run(False)

            @pl.when(row0 + block_rows > rows)
            def _edge():
                run(True)
        else:
            run(False)

        @pl.when(k == pl.num_programs(1) - 1)
        def _finalize():
            partial = (mse_w * jnp.sum(acc_sq[...])
                       + mae_w * jnp.sum(acc_ab[...])) * inv_d
            o_ref[...] = jnp.broadcast_to(
                partial, (1, 8, LANE)).astype(jnp.float32)

    return kernel


@functools.partial(jax.jit,
                   static_argnames=("mse_weight", "mae_weight", "block_rows"))
def weighted_mse_mae(truth, pred, mse_weight=1.0, mae_weight=1.0,
                     block_rows=None):
    assert truth.shape == pred.shape, "truth / pred must have identical shapes"
    assert truth.ndim == 5, "expected (S, B, C, H, W) inputs"
    S, B = truth.shape[:2]
    total = int(np.prod(truth.shape))
    if total == 0:
        return jnp.zeros((), jnp.float32)
    denom = float(S * B)

    # Flatten: contiguous reshape; native dtype kept (upcast happens on-chip).
    t = truth.reshape(-1)
    p = pred.reshape(-1)

    if total % LANE != 0:
        # TODO(synk): rare fallback when the element count isn't a multiple of
        # 128 — the (rows, 128) lane-dense view requires a 128-aligned length,
        # so this pads both flat arrays (one materialized copy). Zero padding
        # contributes exactly 0 to both sums. Common nowcasting shapes
        # (H*W in {256, 4096, 230400, ...}) never take this path.
        pad = (-total) % LANE
        t = jnp.concatenate([t, jnp.zeros((pad,), t.dtype)])
        p = jnp.concatenate([p, jnp.zeros((pad,), p.dtype)])

    rows = t.shape[0] // LANE
    t2 = t.reshape(rows, LANE)
    p2 = p.reshape(rows, LANE)

    # Sublane alignment: 8 rows (f32) / 16 (bf16,f16) / 32 (int8,fp8) so every
    # load is a full packed vreg and block_rows respects the native tile.
    align = max(_sublane_align(truth.dtype), _sublane_align(pred.dtype))

    if rows < align:
        # Tiny input: pad up to one packed tile (negligible copy).
        pad_r = align - rows
        t2 = jnp.concatenate([t2, jnp.zeros((pad_r, LANE), t2.dtype)], axis=0)
        p2 = jnp.concatenate([p2, jnp.zeros((pad_r, LANE), p2.dtype)], axis=0)
        rows = align

    max_itemsize = max(np.dtype(truth.dtype).itemsize,
                       np.dtype(pred.dtype).itemsize)

    if block_rows is None:
        target = TARGET_BLOCK_BYTES // (LANE * max_itemsize)
    else:
        target = int(block_rows)
    target = max(align, (target // align) * align)
    block_rows = min(target, (rows // align) * align)
    assert block_rows >= align and block_rows % align == 0

    chunk_rows = align                       # one packed vreg of rows per step
    n_chunks = block_rows // chunk_rows
    unroll = max(1, min(8, n_chunks))

    total_tiles = pl.cdiv(rows, block_rows)
    num_partials = NUM_PARTIALS if total_tiles >= NUM_PARTIALS else 1
    tiles_per = pl.cdiv(total_tiles, num_partials)
    needs_mask = (num_partials * tiles_per * block_rows) != rows
    exact_cover = (num_partials * tiles_per) == total_tiles
    max_block = total_tiles - 1

    if exact_cover:
        in_idx = lambda c, k: (c * tiles_per + k, 0)
    else:
        # Clamp so the DMA never targets a fully out-of-bounds block; the
        # in-kernel mask (based on the un-clamped index) zeroes duplicates.
        in_idx = lambda c, k: (jnp.minimum(c * tiles_per + k, max_block), 0)

    kernel = _make_kernel(
        mse_weight=mse_weight, mae_weight=mae_weight, inv_denom=1.0 / denom,
        block_rows=block_rows, chunk_rows=chunk_rows, tiles_per=tiles_per,
        rows=rows, needs_mask=needs_mask, unroll=unroll)

    # Double-buffered inputs: 2 inputs x 2 buffers x block_bytes (+ headroom).
    # Raises v5e's 16 MiB default scoped limit; stays under v7x's 64 MiB VMEM.
    block_bytes = block_rows * LANE * max_itemsize
    vmem_limit = int(min(64 << 20, max(32 << 20, 4 * block_bytes + (16 << 20))))

    cost = pl.CostEstimate(
        flops=5 * total,                       # sub, mul, add, abs, add per elem
        transcendentals=0,
        bytes_accessed=int(total * (np.dtype(truth.dtype).itemsize
                                    + np.dtype(pred.dtype).itemsize)
                           + num_partials * 8 * LANE * 4))

    out = pl.pallas_call(
        kernel,
        out_shape=jax.ShapeDtypeStruct((num_partials, 8, LANE), jnp.float32),
        grid_spec=pltpu.PrefetchScalarGridSpec(
            num_scalar_prefetch=0,
            grid=(num_partials, tiles_per),
            in_specs=[
                pl.BlockSpec((block_rows, LANE), in_idx),
                pl.BlockSpec((block_rows, LANE), in_idx),
            ],
            out_specs=pl.BlockSpec((1, 8, LANE), lambda c, k: (c, 0, 0)),
            scratch_shapes=[
                pltpu.VMEM((8, LANE), jnp.float32),  # sum of squares
                pltpu.VMEM((8, LANE), jnp.float32),  # sum of abs
            ],
        ),
        compiler_params=pltpu.CompilerParams(
            dimension_semantics=("parallel", "arbitrary"),
            vmem_limit_bytes=vmem_limit,
        ),
        cost_estimate=cost,
    )(t2, p2)

    # Each partial block is a splat of its (already weighted & normalized)
    # partial sum; add the partials.
    return jnp.sum(out[:, 0, 0])


def _reference(truth, pred, mse_weight=1.0, mae_weight=1.0):
    differ = truth.astype(jnp.float32) - pred.astype(jnp.float32)
    mse = jnp.sum(differ ** 2, axis=(2, 3, 4))
    mae = jnp.sum(jnp.abs(differ), axis=(2, 3, 4))
    return mse_weight * jnp.mean(mse) + mae_weight * jnp.mean(mae)


if __name__ == "__main__":
    root = jax.random.PRNGKey(0)

    cases = [
        # (shape, dtype, mse_w, mae_w, block_rows_override)
        ((4, 2, 1, 16, 16), jnp.float32, 1.0, 1.0, None),   # single block, no mask
        ((4, 2, 2, 16, 16), jnp.float32, 2.0, 0.5, 8),      # multi-tile, 2 partials
        ((5, 2, 1, 16, 16), jnp.float32, 1.0, 1.0, None),   # interior + masked edge block
        ((4, 2, 3, 16, 16), jnp.float32, 1.0, 1.0, 16),     # clamped duplicate block
        ((3, 2, 1, 13, 16), jnp.float32, 1.0, 1.0, None),   # non-128-aligned fallback
        ((4, 2, 2, 16, 16), jnp.bfloat16, 1.0, 1.0, None),  # bf16, 16-row packing
    ]
    for idx, (shape, dtype, mw, aw, br) in enumerate(cases):
        k1, k2 = jax.random.split(jax.random.fold_in(root, idx))
        truth = jax.random.normal(k1, shape, dtype=jnp.float32).astype(dtype)
        pred = jax.random.normal(k2, shape, dtype=jnp.float32).astype(dtype)

        loss = jax.block_until_ready(
            weighted_mse_mae(truth, pred, mse_weight=mw, mae_weight=aw,
                             block_rows=br))
        ref = jax.block_until_ready(_reference(truth, pred, mw, aw))
        assert np.allclose(np.asarray(loss), np.asarray(ref),
                           rtol=1e-5, atol=1e-4), (
            f"case {idx}: kernel={float(loss)} ref={float(ref)}")

    print("KERNEL_OK")
</pallas_src>

<mosaic_0001>
module attributes {stable_mosaic.version = 11 : i64} {
  func.func @kernel(%arg0: i32, %arg1: i32, %arg2: memref<16x128xf32, #tpu.memory_space<vmem>>, %arg3: memref<16x128xf32, #tpu.memory_space<vmem>>, %arg4: memref<1x8x128xf32, #tpu.memory_space<vmem>>, %arg5: memref<8x128xf32, #tpu.memory_space<vmem>>, %arg6: memref<8x128xf32, #tpu.memory_space<vmem>>) attributes {dimension_semantics = [#tpu.dimension_semantics<parallel>, #tpu.dimension_semantics<arbitrary>], iteration_bounds = array<i64: 1, 1>, scalar_prefetch = 0 : i64, scratch_operands = 2 : i64, tpu.core_type = #tpu.core_type<tc>, window_params = [{transform_indices = @transform_0, window_bounds = array<i64: 16, 128>}, {transform_indices = @transform_1, window_bounds = array<i64: 16, 128>}, {transform_indices = @transform_2, window_bounds = array<i64: 1, 8, 128>}]} {
    %c0_i32 = arith.constant 0 : i32
    %0 = arith.cmpi eq, %arg1, %c0_i32 : i32
    %1 = arith.extui %0 : i1 to i32
    %c0_i32_0 = arith.constant 0 : i32
    %2 = arith.cmpi ne, %1, %c0_i32_0 : i32
    scf.if %2 {
      %cst = arith.constant 0.000000e+00 : f32
      %36 = vector.broadcast %cst : f32 to vector<8x128xf32>
      %c0_24 = arith.constant 0 : index
      %c0_25 = arith.constant 0 : index
      %37 = vector.load %arg5[%c0_24, %c0_25] : memref<8x128xf32, #tpu.memory_space<vmem>>, vector<8x128xf32>
      tpu.vector_store %arg5[%c0_24, %c0_25], %36 {strides = array<i32>} : memref<8x128xf32, #tpu.memory_space<vmem>>, vector<8x128xf32>,
      %cst_26 = arith.constant 0.000000e+00 : f32
      %38 = vector.broadcast %cst_26 : f32 to vector<8x128xf32>
      %c0_27 = arith.constant 0 : index
      %c0_28 = arith.constant 0 : index
      %39 = vector.load %arg6[%c0_27, %c0_28] : memref<8x128xf32, #tpu.memory_space<vmem>>, vector<8x128xf32>
      tpu.vector_store %arg6[%c0_27, %c0_28], %38 {strides = array<i32>} : memref<8x128xf32, #tpu.memory_space<vmem>>, vector<8x128xf32>,
    } else {
    }
    %c0_i32_1 = arith.constant 0 : i32
    %c8_i32 = arith.constant 8 : i32
    %3 = arith.muli %c0_i32_1, %c8_i32 : i32
    %4 = tpu.assume_multiple %3, 8 : i32
    %5 = arith.index_cast %4 : i32 to index
    %c0 = arith.constant 0 : index
    %6 = vector.load %arg2[%5, %c0] : memref<16x128xf32, #tpu.memory_space<vmem>>, vector<8x128xf32>
    %7 = arith.index_cast %4 : i32 to index
    %c0_2 = arith.constant 0 : index
    %8 = vector.load %arg3[%7, %c0_2] : memref<16x128xf32, #tpu.memory_space<vmem>>, vector<8x128xf32>
    %9 = arith.subf %6, %8 : vector<8x128xf32>
    %10 = arith.mulf %9, %9 : vector<8x128xf32>
    %11 = math.absf %9 : vector<8x128xf32>
    %c0_3 = arith.constant 0 : index
    %c0_4 = arith.constant 0 : index
    %12 = vector.load %arg5[%c0_3, %c0_4] : memref<8x128xf32, #tpu.memory_space<vmem>>, vector<8x128xf32>
    %13 = arith.addf %12, %10 : vector<8x128xf32>
    %c0_5 = arith.constant 0 : index
    %c0_6 = arith.constant 0 : index
    %14 = vector.load %arg5[%c0_5, %c0_6] : memref<8x128xf32, #tpu.memory_space<vmem>>, vector<8x128xf32>
    tpu.vector_store %arg5[%c0_5, %c0_6], %13 {strides = array<i32>} : memref<8x128xf32, #tpu.memory_space<vmem>>, vector<8x128xf32>,
    %c0_7 = arith.constant 0 : index
    %c0_8 = arith.constant 0 : index
    %15 = vector.load %arg6[%c0_7, %c0_8] : memref<8x128xf32, #tpu.memory_space<vmem>>, vector<8x128xf32>
    %16 = arith.addf %15, %11 : vector<8x128xf32>
    %c0_9 = arith.constant 0 : index
    %c0_10 = arith.constant 0 : index
    %17 = vector.load %arg6[%c0_9, %c0_10] : memref<8x128xf32, #tpu.memory_space<vmem>>, vector<8x128xf32>
    tpu.vector_store %arg6[%c0_9, %c0_10], %16 {strides = array<i32>} : memref<8x128xf32, #tpu.memory_space<vmem>>, vector<8x128xf32>,
    %c1_i32 = arith.constant 1 : i32
    %c8_i32_11 = arith.constant 8 : i32
    %18 = arith.muli %c1_i32, %c8_i32_11 : i32
    %19 = tpu.assume_multiple %18, 8 : i32
    %20 = arith.index_cast %19 : i32 to index
    %c0_12 = arith.constant 0 : index
    %21 = vector.load %arg2[%20, %c0_12] : memref<16x128xf32, #tpu.memory_space<vmem>>, vector<8x128xf32>
    %22 = arith.index_cast %19 : i32 to index
    %c0_13 = arith.constant 0 : index
    %23 = vector.load %arg3[%22, %c0_13] : memref<16x128xf32, #tpu.memory_space<vmem>>, vector<8x128xf32>
    %24 = arith.subf %21, %23 : vector<8x128xf32>
    %25 = arith.mulf %24, %24 : vector<8x128xf32>
    %26 = math.absf %24 : vector<8x128xf32>
    %c0_14 = arith.constant 0 : index
    %c0_15 = arith.constant 0 : index
    %27 = vector.load %arg5[%c0_14, %c0_15] : memref<8x128xf32, #tpu.memory_space<vmem>>, vector<8x128xf32>
    %28 = arith.addf %27, %25 : vector<8x128xf32>
    %c0_16 = arith.constant 0 : index
    %c0_17 = arith.constant 0 : index
    %29 = vector.load %arg5[%c0_16, %c0_17] : memref<8x128xf32, #tpu.memory_space<vmem>>, vector<8x128xf32>
    tpu.vector_store %arg5[%c0_16, %c0_17], %28 {strides = array<i32>} : memref<8x128xf32, #tpu.memory_space<vmem>>, vector<8x128xf32>,
    %c0_18 = arith.constant 0 : index
    %c0_19 = arith.constant 0 : index
    %30 = vector.load %arg6[%c0_18, %c0_19] : memref<8x128xf32, #tpu.memory_space<vmem>>, vector<8x128xf32>
    %31 = arith.addf %30, %26 : vector<8x128xf32>
    %c0_20 = arith.constant 0 : index
    %c0_21 = arith.constant 0 : index
    %32 = vector.load %arg6[%c0_20, %c0_21] : memref<8x128xf32, #tpu.memory_space<vmem>>, vector<8x128xf32>
    tpu.vector_store %arg6[%c0_20, %c0_21], %31 {strides = array<i32>} : memref<8x128xf32, #tpu.memory_space<vmem>>, vector<8x128xf32>,
    %c2_i32 = arith.constant 2 : i32
    %c0_i32_22 = arith.constant 0 : i32
    %33 = arith.cmpi eq, %arg1, %c0_i32_22 : i32
    %34 = arith.extui %33 : i1 to i32
    %c0_i32_23 = arith.constant 0 : i32
    %35 = arith.cmpi ne, %34, %c0_i32_23 : i32
    scf.if %35 {
      %c0_24 = arith.constant 0 : index
      %c0_25 = arith.constant 0 : index
      %36 = vector.load %arg5[%c0_24, %c0_25] : memref<8x128xf32, #tpu.memory_space<vmem>>, vector<8x128xf32>
      %37 = vector.shape_cast %36 : vector<8x128xf32> to vector<1x8x128xf32>
      %cst = arith.constant dense<0.000000e+00> : vector<1xf32>
      %38 = vector.multi_reduction <add>, %37, %cst [1, 2] : vector<1x8x128xf32> to vector<1xf32>
      %39 = vector.shape_cast %38 : vector<1xf32> to vector<1x1x1xf32>
      %40 = vector.extract %39[0, 0, 0] : f32 from vector<1x1x1xf32>
      %cst_26 = arith.constant 1.000000e+00 : f32
      %41 = arith.mulf %cst_26, %40 : f32
      %c0_27 = arith.constant 0 : index
      %c0_28 = arith.constant 0 : index
      %42 = vector.load %arg6[%c0_27, %c0_28] : memref<8x128xf32, #tpu.memory_space<vmem>>, vector<8x128xf32>
      %43 = vector.shape_cast %42 : vector<8x128xf32> to vector<1x8x128xf32>
      %cst_29 = arith.constant dense<0.000000e+00> : vector<1xf32>
      %44 = vector.multi_reduction <add>, %43, %cst_29 [1, 2] : vector<1x8x128xf32> to vector<1xf32>
      %45 = vector.shape_cast %44 : vector<1xf32> to vector<1x1x1xf32>
      %46 = vector.extract %45[0, 0, 0] : f32 from vector<1x1x1xf32>
      %cst_30 = arith.constant 1.000000e+00 : f32
      %47 = arith.mulf %cst_30, %46 : f32
      %48 = arith.addf %41, %47 : f32
      %cst_31 = arith.constant 1.250000e-01 : f32
      %49 = arith.mulf %48, %cst_31 : f32
      %50 = vector.broadcast %49 : f32 to vector<1x8x128xf32>
      %c0_32 = arith.constant 0 : index
      %c0_33 = arith.constant 0 : index
      %c0_34 = arith.constant 0 : index
      %51 = vector.load %arg4[%c0_32, %c0_33, %c0_34] : memref<1x8x128xf32, #tpu.memory_space<vmem>>, vector<1x8x128xf32>
      tpu.vector_store %arg4[%c0_32, %c0_33, %c0_34], %50 {strides = array<i32>} : memref<1x8x128xf32, #tpu.memory_space<vmem>>, vector<1x8x128xf32>,
    } else {
    }
    return
  }
  func.func @transform_0(%arg0: i32, %arg1: i32) -> (i32, i32) {
    %c1_i32 = arith.constant 1 : i32
    %0 = arith.muli %arg0, %c1_i32 : i32
    %1 = arith.addi %0, %arg1 : i32
    %c0_i32 = arith.constant 0 : i32
    %c0_i32_0 = arith.constant 0 : i32
    return %1, %c0_i32 : i32, i32
  }
  func.func @transform_1(%arg0: i32, %arg1: i32) -> (i32, i32) {
    %c1_i32 = arith.constant 1 : i32
    %0 = arith.muli %arg0, %c1_i32 : i32
    %1 = arith.addi %0, %arg1 : i32
    %c0_i32 = arith.constant 0 : i32
    %c0_i32_0 = arith.constant 0 : i32
    return %1, %c0_i32 : i32, i32
  }
  func.func @transform_2(%arg0: i32, %arg1: i32) -> (i32, i32, i32) {
    %c0_i32 = arith.constant 0 : i32
    %c0_i32_0 = arith.constant 0 : i32
    %c0_i32_1 = arith.constant 0 : i32
    return %arg0, %c0_i32, %c0_i32_0 : i32, i32, i32
  }
}

</mosaic_0001>

<bundles_post_ra>
// kernel: weighted_mse_mae.1
= control target key start
LH: loop header
LB: loop body
LE: loop exit
PB: predicated region body
PF: predicated region fallthrough
CT: control target
= control target key end

     0   :  { %s164_s0 = inlined_call_operand.vmem [shape: f32[16,128], index: 0, kind: input, shape index: {}]   ;;  %s165_s1 = inlined_call_operand.vmem [shape: f32[16,128], index: 1, kind: input, shape index: {}]   ;;  %s166_s2 = inlined_call_operand.vmem [shape: f32[1,8,128], index: 2, kind: output, shape index: {}]  }
   0x1   :  { %v61_v0 = vld [vmem:[%s164_s0] sm:$0xff]  ;;  %v128_v2 = vld [vmem:[%s164_s0 + $0x8] sm:$0xff] }
   0x2   :  { %v62_v1 = vld [vmem:[%s165_s1] sm:$0xff]  ;;  %v129_v4 = vld [vmem:[%s165_s1 + $0x8] sm:$0xff] }
   0x3   :  { %v63_v3 = vsub.f32 %v61_v0, %v62_v1  ;;  %v76_v5 = vsub.f32 %v128_v2, %v129_v4 }
   0x5   :  { %v64_v6 = vmul.f32 %v63_v3, %v63_v3  ;;  %v77_v7 = vmul.f32 %v76_v5, %v76_v5  ;;  %v65_v8 = vand.u32 2147483647, %v63_v3  ;;  %v78_v9 = vand.u32 2147483647, %v76_v5 }
   0x7   :  { %v80_v10 = vadd.f32 %v77_v7, %v64_v6  ;;  %v83_v11 = vadd.f32 %v78_v9, %v65_v8 }
   0x9   :  { %89 = vadd.xlane.f32.xlu0 %v80_v10 }
   0xd   :  { %99 = vadd.xlane.f32.xlu0 %v83_v11 }
  0x96   :  { %v90_v12 = vpop.xlane.xlu0 %89 }
  0x97   :  { %v91_v13 = vrot.slane %v90_v12, 4 }
  0x99   :  { %v92_v14 = vadd.f32 %v91_v13, %v90_v12 }
  0x9a   :  { %v100_v15 = vpop.xlane.xlu0 %99 }
  0x9b   :  { %v93_v16 = vrot.slane %v92_v14, 2  ;;  %v101_v17 = vrot.slane %v100_v15, 4 }
  0x9d   :  { %v102_v18 = vadd.f32 %v101_v17, %v100_v15  ;;  %v94_v19 = vadd.f32 %v93_v16, %v92_v14 }
  0x9f   :  { %v103_v20 = vrot.slane %v102_v18, 2  ;;  %v95_v21 = vrot.slane %v94_v19, 1 }
  0xa1   :  { %v104_v22 = vadd.f32 %v103_v20, %v102_v18  ;;  %v96_v23 = vadd.f32 %v95_v21, %v94_v19 }
  0xa3   :  { %130 = vpush %v96_v23  ;;  %v105_v24 = vrot.slane %v104_v22, 1 }
  0xa5   :  { %v106_v25 = vadd.f32 %v105_v24, %v104_v22 }
  0xa7   :  { %132 = vpush %v106_v25 }
  0xd4   :  { %s131_s0 = spop %130 }
  0xd8   :  { %s133_s1 = spop %132 }
  0xd9   :  { %s108_s17 = sadd.f32 %s133_s1, %s131_s0 }
  0xdb   :  { %s109_s18 = smul.f32 0.125, %s108_s17 }
  0xdd   :  { %v110_v26 = vstv %s109_s18 }
  0xde   :  { %111 = vst [vmem:[%s166_s2] sm:$0xff] %v110_v26 }

</bundles_post_ra>
